<compile_context>
chip_gen: v6e
topology: v6e:2x2x1
jax: 0.10.0
libtpu: 0.0.40
codegen_flags: <defaults>
</compile_context>

<pallas_src>
import math

import jax
import jax.numpy as jnp
from jax.experimental import pallas as pl
from jax.experimental.pallas import tpu as pltpu


def _mre_kernel(o_ref, t_ref, loss_ref, cnt_ref):
    # o_ref/t_ref: (1, 8, TF) input tiles.
    # loss_ref/cnt_ref: (1, 8, 1) f32 per-sample accumulators, resident
    # across the reduction (k) grid axis.
    @pl.when(pl.program_id(1) == 0)
    def _():
        loss_ref[...] = jnp.zeros_like(loss_ref)
        cnt_ref[...] = jnp.zeros_like(cnt_ref)

    t = t_ref[0].astype(jnp.float32)           # (8, TF)
    o = o_ref[0].astype(jnp.float32)
    val = t > 0.0                              # valid-pixel mask
    # Same arithmetic as |t*val - o*val| / (t*val + 1e-6) * val:
    #   valid pixels  -> |t - o| / (t + 1e-6)
    #   masked pixels -> exactly 0
    r = jnp.where(val, jnp.abs(t - o) / (t + 1e-6), 0.0)

    loss_ref[0] = loss_ref[0] + jnp.sum(r, axis=-1, keepdims=True)
    cnt_ref[0] = cnt_ref[0] + jnp.sum(val.astype(jnp.float32), axis=-1,
                                      keepdims=True)


def mre(outputs, target, *, lane_tile=8192):
    """outputs, target: (N, C, H, W) (or any (N, ...)) -> scalar f32 MRE."""
    assert outputs.shape == target.shape
    assert lane_tile % 128 == 0
    n = outputs.shape[0]
    f = math.prod(outputs.shape[1:])

    # Glue: flatten per-sample pixels (matches r.view(N, 1, -1)).
    o2 = outputs.reshape(n, f)
    t2 = target.reshape(n, f)
    # Keep bf16/f32 in HBM (kernel upcasts); cast anything else to f32.
    if o2.dtype not in (jnp.float32, jnp.bfloat16):
        o2 = o2.astype(jnp.float32)
    if t2.dtype not in (jnp.float32, jnp.bfloat16):
        t2 = t2.astype(jnp.float32)

    # Lane-tile width (multiple of 128); each grid step consumes 8*tf
    # elements per sample (8 sublanes x tf lanes). Shrink for tiny inputs so
    # the toy case does not over-pad.
    tf = min(lane_tile, pl.cdiv(f, 8 * 128) * 128)
    chunk = 8 * tf
    fp = pl.cdiv(f, chunk) * chunk
    if fp != f:
        # Zero padding: target <= 0 => masked, so loss and cnt are exact.
        o2 = jnp.pad(o2, ((0, 0), (0, fp - f)))
        t2 = jnp.pad(t2, ((0, 0), (0, fp - f)))

    # (N, 8, fp//8): lane- and sublane-dense per-sample layout.
    o3 = o2.reshape(n, 8, fp // 8)
    t3 = t2.reshape(n, 8, fp // 8)
    k_steps = (fp // 8) // tf

    loss_p, cnt_p = pl.pallas_call(
        _mre_kernel,
        grid=(n, k_steps),
        in_specs=[
            pl.BlockSpec((1, 8, tf), lambda i, k: (i, 0, k)),
            pl.BlockSpec((1, 8, tf), lambda i, k: (i, 0, k)),
        ],
        out_specs=(
            pl.BlockSpec((1, 8, 1), lambda i, k: (i, 0, 0)),
            pl.BlockSpec((1, 8, 1), lambda i, k: (i, 0, 0)),
        ),
        out_shape=(
            jax.ShapeDtypeStruct((n, 8, 1), jnp.float32),
            jax.ShapeDtypeStruct((n, 8, 1), jnp.float32),
        ),
        compiler_params=pltpu.CompilerParams(
            dimension_semantics=("parallel", "arbitrary")),
    )(o3, t3)

    # Tiny finalization in XLA: per-sample loss/cnt, then batch mean.
    loss = jnp.sum(loss_p, axis=(1, 2))   # (N,)
    cnt = jnp.sum(cnt_p, axis=(1, 2))     # (N,)
    # NOTE: cnt == 0 (no valid pixels in a sample) yields NaN, matching the
    # PyTorch reference exactly.
    return jnp.mean(loss / cnt)


if __name__ == "__main__":
    key = jax.random.PRNGKey(0)
    k1, k2 = jax.random.split(key)
    N, C, H, W = 2, 4, 16, 16
    outputs = jax.random.uniform(k1, (N, C, H, W), jnp.float32, 0.0, 2.0)
    # target has both positive (valid) and non-positive (invalid) pixels
    target = jax.random.uniform(k2, (N, C, H, W), jnp.float32, -1.0, 3.0)

    result = jax.block_until_ready(mre(outputs, target))

    # Pure-JAX reference of the torch code.
    val = (target > 0).astype(jnp.float32)
    err = jnp.abs(target * val - outputs * val)
    r = err / (target * val + 1e-6) * val
    loss = jnp.sum(r.reshape(N, 1, -1), axis=-1, keepdims=True)
    cnt = jnp.sum(val.reshape(N, 1, -1), axis=-1, keepdims=True)
    ref = jnp.mean(loss / cnt)
    assert jnp.allclose(result, ref, rtol=1e-5, atol=1e-6), (result, ref)

    print("KERNEL_OK")
</pallas_src>

<mosaic_0001>
module attributes {stable_mosaic.version = 11 : i64} {
  func.func @_mre_kernel(%arg0: i32, %arg1: i32, %arg2: memref<1x8x128xf32, #tpu.memory_space<vmem>>, %arg3: memref<1x8x128xf32, #tpu.memory_space<vmem>>, %arg4: memref<1x8x1xf32, #tpu.memory_space<vmem>>, %arg5: memref<1x8x1xf32, #tpu.memory_space<vmem>>) attributes {dimension_semantics = [#tpu.dimension_semantics<parallel>, #tpu.dimension_semantics<arbitrary>], iteration_bounds = array<i64: 2, 1>, scalar_prefetch = 0 : i64, scratch_operands = 0 : i64, tpu.core_type = #tpu.core_type<tc>, window_params = [{transform_indices = @transform_0, window_bounds = array<i64: 1, 8, 128>}, {transform_indices = @transform_1, window_bounds = array<i64: 1, 8, 128>}, {transform_indices = @transform_2, window_bounds = array<i64: 1, 8, 1>}, {transform_indices = @transform_3, window_bounds = array<i64: 1, 8, 1>}]} {
    %c0_i32 = arith.constant 0 : i32
    %0 = arith.cmpi eq, %arg1, %c0_i32 : i32
    %1 = arith.extui %0 : i1 to i32
    %c0_i32_0 = arith.constant 0 : i32
    %2 = arith.cmpi ne, %1, %c0_i32_0 : i32
    scf.if %2 {
      %cst_22 = arith.constant 0.000000e+00 : f32
      %34 = vector.broadcast %cst_22 : f32 to vector<1x8x1xf32>
      %c0_23 = arith.constant 0 : index
      %c0_24 = arith.constant 0 : index
      %c0_25 = arith.constant 0 : index
      %35 = vector.load %arg4[%c0_23, %c0_24, %c0_25] : memref<1x8x1xf32, #tpu.memory_space<vmem>>, vector<1x8x1xf32>
      tpu.vector_store %arg4[%c0_23, %c0_24, %c0_25], %34 {strides = array<i32>} : memref<1x8x1xf32, #tpu.memory_space<vmem>>, vector<1x8x1xf32>,
      %cst_26 = arith.constant 0.000000e+00 : f32
      %36 = vector.broadcast %cst_26 : f32 to vector<1x8x1xf32>
      %c0_27 = arith.constant 0 : index
      %c0_28 = arith.constant 0 : index
      %c0_29 = arith.constant 0 : index
      %37 = vector.load %arg5[%c0_27, %c0_28, %c0_29] : memref<1x8x1xf32, #tpu.memory_space<vmem>>, vector<1x8x1xf32>
      tpu.vector_store %arg5[%c0_27, %c0_28, %c0_29], %36 {strides = array<i32>} : memref<1x8x1xf32, #tpu.memory_space<vmem>>, vector<1x8x1xf32>,
    } else {
    }
    %c0 = arith.constant 0 : index
    %c0_1 = arith.constant 0 : index
    %c0_2 = arith.constant 0 : index
    %3 = vector.load %arg3[%c0, %c0_1, %c0_2] : memref<1x8x128xf32, #tpu.memory_space<vmem>>, vector<1x8x128xf32>
    %4 = vector.shape_cast %3 : vector<1x8x128xf32> to vector<8x128xf32>
    %c0_3 = arith.constant 0 : index
    %c0_4 = arith.constant 0 : index
    %c0_5 = arith.constant 0 : index
    %5 = vector.load %arg2[%c0_3, %c0_4, %c0_5] : memref<1x8x128xf32, #tpu.memory_space<vmem>>, vector<1x8x128xf32>
    %6 = vector.shape_cast %5 : vector<1x8x128xf32> to vector<8x128xf32>
    %cst = arith.constant 0.000000e+00 : f32
    %7 = vector.broadcast %cst : f32 to vector<8x128xf32>
    %8 = arith.cmpf ogt, %4, %7 : vector<8x128xf32>
    %9 = arith.subf %4, %6 : vector<8x128xf32>
    %10 = math.absf %9 : vector<8x128xf32>
    %cst_6 = arith.constant 9.99999997E-7 : f32
    %11 = vector.broadcast %cst_6 : f32 to vector<8x128xf32>
    %12 = arith.addf %4, %11 : vector<8x128xf32>
    %13 = arith.divf %10, %12 : vector<8x128xf32>
    %cst_7 = arith.constant 0.000000e+00 : f32
    %14 = vector.broadcast %cst_7 : f32 to vector<8x128xf32>
    %15 = arith.select %8, %13, %14 : vector<8x128xi1>, vector<8x128xf32>
    %c0_8 = arith.constant 0 : index
    %c0_9 = arith.constant 0 : index
    %c0_10 = arith.constant 0 : index
    %16 = vector.load %arg4[%c0_8, %c0_9, %c0_10] : memref<1x8x1xf32, #tpu.memory_space<vmem>>, vector<1x8x1xf32>
    %17 = vector.shape_cast %16 : vector<1x8x1xf32> to vector<8x1xf32>
    %cst_11 = arith.constant dense<0.000000e+00> : vector<8xf32>
    %18 = vector.multi_reduction <add>, %15, %cst_11 [1] : vector<8x128xf32> to vector<8xf32>
    %19 = vector.shape_cast %18 : vector<8xf32> to vector<8x1xf32>
    %20 = arith.addf %17, %19 : vector<8x1xf32>
    %c0_12 = arith.constant 0 : index
    %c0_13 = arith.constant 0 : index
    %c0_14 = arith.constant 0 : index
    %21 = vector.load %arg4[%c0_12, %c0_13, %c0_14] : memref<1x8x1xf32, #tpu.memory_space<vmem>>, vector<1x8x1xf32>
    %22 = vector.shape_cast %21 : vector<1x8x1xf32> to vector<8x1xf32>
    %23 = vector.shape_cast %20 : vector<8x1xf32> to vector<1x8x1xf32>
    tpu.vector_store %arg4[%c0_12, %c0_13, %c0_14], %23 {strides = array<i32>} : memref<1x8x1xf32, #tpu.memory_space<vmem>>, vector<1x8x1xf32>,
    %c0_15 = arith.constant 0 : index
    %c0_16 = arith.constant 0 : index
    %c0_17 = arith.constant 0 : index
    %24 = vector.load %arg5[%c0_15, %c0_16, %c0_17] : memref<1x8x1xf32, #tpu.memory_space<vmem>>, vector<1x8x1xf32>
    %25 = vector.shape_cast %24 : vector<1x8x1xf32> to vector<8x1xf32>
    %26 = arith.extui %8 : vector<8x128xi1> to vector<8x128xi32>
    %27 = arith.sitofp %26 : vector<8x128xi32> to vector<8x128xf32>
    %cst_18 = arith.constant dense<0.000000e+00> : vector<8xf32>
    %28 = vector.multi_reduction <add>, %27, %cst_18 [1] : vector<8x128xf32> to vector<8xf32>
    %29 = vector.shape_cast %28 : vector<8xf32> to vector<8x1xf32>
    %30 = arith.addf %25, %29 : vector<8x1xf32>
    %c0_19 = arith.constant 0 : index
    %c0_20 = arith.constant 0 : index
    %c0_21 = arith.constant 0 : index
    %31 = vector.load %arg5[%c0_19, %c0_20, %c0_21] : memref<1x8x1xf32, #tpu.memory_space<vmem>>, vector<1x8x1xf32>
    %32 = vector.shape_cast %31 : vector<1x8x1xf32> to vector<8x1xf32>
    %33 = vector.shape_cast %30 : vector<8x1xf32> to vector<1x8x1xf32>
    tpu.vector_store %arg5[%c0_19, %c0_20, %c0_21], %33 {strides = array<i32>} : memref<1x8x1xf32, #tpu.memory_space<vmem>>, vector<1x8x1xf32>,
    return
  }
  func.func @transform_0(%arg0: i32, %arg1: i32) -> (i32, i32, i32) {
    %c0_i32 = arith.constant 0 : i32
    %c0_i32_0 = arith.constant 0 : i32
    return %arg0, %c0_i32, %arg1 : i32, i32, i32
  }
  func.func @transform_1(%arg0: i32, %arg1: i32) -> (i32, i32, i32) {
    %c0_i32 = arith.constant 0 : i32
    %c0_i32_0 = arith.constant 0 : i32
    return %arg0, %c0_i32, %arg1 : i32, i32, i32
  }
  func.func @transform_2(%arg0: i32, %arg1: i32) -> (i32, i32, i32) {
    %c0_i32 = arith.constant 0 : i32
    %c0_i32_0 = arith.constant 0 : i32
    %c0_i32_1 = arith.constant 0 : i32
    return %arg0, %c0_i32, %c0_i32_0 : i32, i32, i32
  }
  func.func @transform_3(%arg0: i32, %arg1: i32) -> (i32, i32, i32) {
    %c0_i32 = arith.constant 0 : i32
    %c0_i32_0 = arith.constant 0 : i32
    %c0_i32_1 = arith.constant 0 : i32
    return %arg0, %c0_i32, %c0_i32_0 : i32, i32, i32
  }
}

</mosaic_0001>

<bundles_post_ra>
// kernel: tpu_custom_call.1
= control target key start
LH: loop header
LB: loop body
LE: loop exit
PB: predicated region body
PF: predicated region fallthrough
CT: control target
= control target key end

     0   :  { %9 = vsyncpa [#allocation3], 0  ;;  %s757_s0 = inlined_call_operand.hbm [shape: f32[2,8,128], index: 0, kind: input, shape index: {}]   ;;  %s758_s1 = inlined_call_operand.hbm [shape: f32[2,8,128], index: 1, kind: input, shape index: {}]   ;;  %s759_s2 = inlined_call_operand.vmem [shape: f32[2,8,1], index: 2, kind: output, shape index: {0}]   ;;  %s760_s3 = inlined_call_operand.vmem [shape: f32[2,8,1], index: 3, kind: output, shape index: {1}]  }
   0x1   :  { %11 = vsyncpa [#allocation3 + $0x1], 0 }
   0x2   :  { %12 = vsyncpa [#allocation5], 0 }
   0x3   :  { %14 = vsyncpa [#allocation5 + $0x1], 0  ;;  %s624_s12 = smov 0   ;;  %s626_s13 = smov 0  }
   0x4   :  { %s628_s14 = smov 0   ;;  %s630_s15 = smov 0  }
   0x5   :  { %s632_s16 = smov 0   ;;  %s634_s17 = smov 0  }
   0x6 LB: > { %s410_s18 = sadd.s32 4294967295, %s599_s17   ;;  %s32_s19 = sadd.s32 1, %s595_s16  ;;  %s599_s17 = sphi %s634_s17, %s20_s17   ;;  %s595_s16 = sphi %s632_s16, %s769_s16   ;;  %s591_s15 = sphi %s630_s15, %s768_s15   ;;  %s587_s14 = sphi %s628_s14, %s767_s14   ;;  %s583_s13 = sphi %s626_s13, %s766_s13   ;;  %s579_s12 = sphi %s624_s12, %s765_s12  }
   0x7   : > { %p34_p0 = scmp.ge.s32.totalorder %s32_s19, 2  ;;  %s41_s20 = sadd.s32 1, %s587_s14 }
   0x8   : > { %p48_p1 = scmp.ne.s32.totalorder %s587_s14, %s583_s13  ;;  %p49_p2 = scmp.eq.s32.totalorder %s599_s17, 0 }
   0x9   : > { %s771_s19 = smov (%p34_p0, %s32_s19), 0  ;;  %p54_p4 = scmp.ne.s32.totalorder %s583_s13, %s579_s12 }
   0xa   : > { %p660_p3 = por %p49_p2, %p48_p1  ;;  %s36_s22 = ssub.s32 %s595_s16, %s771_s19 }
   0xb   : > { %p55_p5 = scmp.eq.s32.totalorder %s410_s18, 0  ;;  %p39_p6 = scmp.eq.s32.totalorder %s36_s22, 0 }
   0xc   : > { %p437_p8 = scmp.lt.s32.totalorder %s599_s17, 2  ;;  %s676_s25 = sand.u32 1, %s587_s14  }
   0xd   : > { %p667_p7 = por %p55_p5, %p54_p4  ;;  %s415_s26 = sshll.u32 %s595_s16, 7 }
   0xe   : > { %s673_s24 = scalar_select %p39_p6, %s587_s14, %s41_s20  }
   0xf   : > { %s414_s27 = sshll.u32 %s676_s25, 3  ;;  %s168_s30 = scalar_lea.hbm %s757_s0, %s415_s26 }
  0x10   : > { %s162_s4 = scalar_lea.vmem [#allocation2], %s414_s27  ;;  %p685_p9 = pnand %p437_p8, %p660_p3 }
  0x11   : > { %s170_s5 = sshll.u32 %s162_s4, 4  ;;  %p418_p10 = scmp.ge.s32.totalorder %s599_s17, 1  ;;  %s171_s5 = int_to_ptr.vmem [resolvable:$true] %s170_s5 }
  0x12   : > { %p194_p11 = scmp.lt.s32.totalorder %s599_s17, 3  ;;  %s159_s7 = scalar_lea.sflag [#allocation3], %s676_s25 }
  0x13   : > { %p491_p12 = pneg %p685_p9  ;;  %s502_s8 = scalar_lea.vmem %s171_s5, 128 }
  0x14   : > { %p503_p13 = scmp.ne.s32.totalorder %s171_s5, %s502_s8  ;;  %s601_s9 = smov [#allocation2]  }
  0x15   : > { %s507_s10 = sshll.u32 %s601_s9, 4  ;;  %s508_s10 = int_to_ptr.vmem [resolvable:$false] %s507_s10 }
  0x16   : > { %p505_p0 = pnand %p503_p13, %p491_p12  ;;  %s509_s11 = scalar_lea.vmem %s508_s10, 256 }
  0x17   : > { %p510_p2 = scmp.lt.s32.totalorder %s171_s5, %s508_s10  ;;  %p511_p3 = scmp.lt.s32.totalorder %s509_s11, %s502_s8 }
  0x18   : > { %p506_p1 = pneg %p505_p0 }
  0x19   : > { %p512_p4 = por %p511_p3, %p510_p2 }
  0x1b   : > { %p513_p5 = pnand %p512_p4, %p506_p1 }
  0x1d   : > { %516 = shalt.err (!%p513_p5)
}
  0x1e   : > { %433 = dma.hbm_to_vmem [thread:$0]  (!%p685_p9), %s168_s30, 128, %s171_s5, %s159_s7  }
  0x1f   : > { %p703_p6 = pnand %p418_p10, %p194_p11  ;;  %s187_s21 = scalar_lea.hbm %s758_s1, %s415_s26 }
  0x20   : > { %s181_s22 = scalar_lea.vmem [#allocation4], %s414_s27  ;;  %s178_s29 = scalar_lea.sflag [#allocation5], %s676_s25 }
  0x21   : > { %s189_s28 = sshll.u32 %s181_s22, 4  ;;  %s602_s30 = smov [#allocation4]   ;;  %s190_s28 = int_to_ptr.vmem [resolvable:$true] %s189_s28 }
  0x22   : > { %s530_s4 = scalar_lea.vmem %s190_s28, 128  ;;  %s535_s5 = sshll.u32 %s602_s30, 4  ;;  %s536_s5 = int_to_ptr.vmem [resolvable:$false] %s535_s5 }
  0x23   : > { %p531_p8 = scmp.ne.s32.totalorder %s190_s28, %s530_s4  ;;  %s537_s7 = scalar_lea.vmem %s536_s5, 256 }
  0x24   : > { %p538_p10 = scmp.lt.s32.totalorder %s190_s28, %s536_s5  ;;  %p539_p11 = scmp.lt.s32.totalorder %s537_s7, %s530_s4 }
  0x25   : > { %p533_p13 = pnand %p531_p8, %p491_p12 }
  0x26   : > { %p540_p1 = por %p539_p11, %p538_p10 }
  0x27   : > { %p534_p0 = pneg %p533_p13 }
  0x29   : > { %p541_p2 = pnand %p540_p1, %p534_p0 }
  0x2b   : > { %544 = shalt.err (!%p541_p2)
}
  0x2c   : > { %436 = dma.hbm_to_vmem [thread:$0]  (!%p685_p9), %s187_s21, 128, %s190_s28, %s178_s29  }
  0x2d   : > { %198 = sbr.rel (%p703_p6) target bundleno = 218 (0xda), region = 28  ;;  %s200_s25 = sand.u32 (!%p703_p6), 1, %s583_s13  }
  0x2e   : > { %s419_s26 = sshll.u32 (!%p703_p6), %s200_s25, 3  ;;  %s201_s27 = scalar_lea.sflag (!%p703_p6), [#allocation3], %s200_s25 }
  0x2f   : > { %s204_s8 = scalar_lea.vmem (!%p703_p6), [#allocation2], %s419_s26 }
  0x32   : > { %570 = dma.done.wait (%p667_p7), %s201_s27, 128  }
  0x33   : > { %572 = vsyncadd (%p667_p7), %s201_s27, 4294967168  ;;  %s210_s9 = scalar_lea.sflag [#allocation5], %s200_s25  ;;  %s213_s10 = scalar_lea.vmem [#allocation4], %s419_s26 }
  0x34   : > { %574 = dma.done.wait (%p667_p7), %s210_s9, 128  }
  0x35   : > { %576 = vsyncadd (%p667_p7), %s210_s9, 4294967168  ;;  %p244_p9 = scmp.lt.s32.totalorder %s591_s15, 1  ;;  %vm256_vm0 = vcmask 7168   ;;  %v603_v0 = vmov 0.0   ;;  %v259_v1 = vld [vmem:[%s213_s10] sm:$0xff]  ;;  %v260_v3 = vld [vmem:[%s204_s8] sm:$0xff] }
  0x36   : > { %v264_v2 = vadd.f32 1e-06, %v259_v1  ;;  %v262_v4 = vsub.f32 %v259_v1, %v260_v3  ;;  %vm261_vm1 = vcmp.gt.f32.partialorder %v259_v1, 0.0 }
  0x37   : > { %s773_s15 = smov (!%p244_p9, %s591_s15), 1  ;;  %v423_v9 = vsel %vm261_vm1, 1.0, %v603_v0 }
  0x38   : > { %s421_s6 = sshll.u32 %s773_s15, 3  ;;  %487 = vrcp.f32 %v264_v2  ;;  %v263_v5 = vand.u32 2147483647, %v262_v4 }
  0x39   : > { %s247_s18 = scalar_lea.vmem %s759_s2, %s421_s6  ;;  %s251_s20 = scalar_lea.vmem %s760_s3, %s421_s6 }
  0x3a   : > { %257 = vst.msk [vmem:[%s247_s18] sm:$0xff] %vm256_vm0, %v603_v0  ;;  %258 = vst.msk [vmem:[%s251_s20] sm:$0xff] %vm256_vm0, %v603_v0 }
  0x41   : > { %v268_v10 = vld [vmem:[%s247_s18] sm:$0xff] }
  0x42   : > { %v274_v13 = vld [vmem:[%s251_s20] sm:$0xff] }
  0x45   : > { %v488_v6 = vpop.eup %487 }
  0x46   : > { %v266_v7 = vmul.f32 %v488_v6, %v263_v5 }
  0x48   : > { %v267_v8 = vsel %vm261_vm1, %v266_v7, 0.0 }
  0x49   : > { %269 = vadd.xlane.f32.xlu0 %v267_v8 }
  0x4d   : > { %277 = vadd.xlane.f32.xlu0 %v423_v9 }
  0xd2   : > { %v270_v11 = vpop.xlane.xlu0 %269 }
  0xd3   : > { %v271_v12 = vadd.f32 %v270_v11, %v268_v10 }
  0xd5   : > { %273 = vst.msk [vmem:[%s247_s18] sm:$0xff] %vm256_vm0, %v271_v12 }
  0xd6   : > { %v278_v14 = vpop.xlane.xlu0 %277 }
  0xd7   : > { %v279_v15 = vadd.f32 %v278_v14, %v274_v13 }
  0xd9   : > { %280 = vst.msk [vmem:[%s251_s20] sm:$0xff] %vm256_vm0, %v279_v15 }
  0xda PF: > { %s20_s17 = sadd.s32 1, %s599_s17   ;;  %s765_s12 = smov %s583_s13 }
  0xdb   : > { %p17_p7 = scmp.ge.s32.totalorder %s20_s17, 4   ;;  %s766_s13 = smov %s587_s14 }
  0xdc   : > { %s767_s14 = smov %s673_s24  ;;  %s768_s15 = smov %s595_s16 }
  0xdd   : > { %s769_s16 = smov %s771_s19  ;;  %19 = sbr.rel (!%p17_p7) target bundleno = 6 (0x6), region = 97 }
  0xe2   :  { %314 = vsyncpa [#allocation3], 1 }
  0xe3   :  { %316 = vsyncpa [#allocation3 + $0x1], 1 }
  0xe4   :  { %317 = vsyncpa [#allocation5], 1 }
  0xe5   :  { %319 = vsyncpa [#allocation5 + $0x1], 1 }

</bundles_post_ra>
